<compile_context>
chip_gen: v5e
topology: v5e:2x2
jax: 0.10.0
libtpu: 0.0.40
codegen_flags: <defaults>
</compile_context>

<pallas_src>
import functools
import math

import jax
import jax.numpy as jnp
from jax import lax
from jax.experimental import pallas as pl
from jax.experimental.pallas import tpu as pltpu

PADDED_Y_VALUE = -1.0
DEFAULT_EPS = 1e-10
_LN2 = math.log(2.0)
_NEG_BIG = -1e30          # large-negative mask (avoids -inf*0 = NaN hazards)
_UNROLL_MAX_K = 16        # statically unroll the rank loop up to this K


def _pow2(x):
    # 2.0 ** x via exp for robust lowering (EUP).
    return jnp.exp(x * _LN2)


def _exact_recip(x):
    """EUP approximate reciprocal + one Newton step => ~f32-exact, no VPU divide."""
    r = pl.reciprocal(x, approx=True)
    return r * (2.0 - x * r)


def _smoothi_ndcg_kernel(*refs, alpha, delta, K, eps, padded_value, rolled):
    if rolled:
        s_ref, label_ref, idcg_ref, invd_ref, out_ref = refs
    else:
        s_ref, label_ref, idcg_ref, out_ref = refs
        invd_ref = None

    s = s_ref[...]            # (TB, LLP) f32
    label = label_ref[...]    # (TB, LLP) f32
    padded = label == padded_value

    # make_pos_by_subtraction over *valid* entries only; padded slots are kept
    # out of the softmax (additive -1e30 mask) and out of the relevance sum
    # (label=0), which keeps padded inputs finite (forward identical when no
    # padding is present).
    big = jnp.float32(jnp.finfo(jnp.float32).max)
    row_min = jnp.min(jnp.where(padded, big, s), axis=-1, keepdims=True)
    # Fold alpha into the shifted scores once (saves a vmul per elem per k).
    a_s = jnp.where(padded, 0.0, (s - row_min) * alpha)
    lab = jnp.where(padded, 0.0, label)
    # Additive mask hoisted out of the K loop (vadd instead of vselect per k).
    neg_mask = jnp.where(padded, jnp.float32(_NEG_BIG), 0.0)

    one_minus_delta = 1.0 - delta

    def rank_step(prod, dcg, inv_denom_k):
        B = a_s * prod + neg_mask                              # (TB, LLP)
        maxB = jnp.max(B, axis=-1, keepdims=True)              # XLU
        e = jnp.exp(B - maxB)                                  # EUP
        sum_e = jnp.sum(e, axis=-1, keepdims=True)             # (TB, 1)
        sum_le = jnp.sum(lab * e, axis=-1, keepdims=True)      # (TB, 1)
        inv = _exact_recip(sum_e)
        rel_k = sum_le * inv                                   # expected relevance
        dcg = dcg + _pow2(rel_k) * inv_denom_k
        # TODO(synk): reference detaches (stop_grad) this factor; forward value is
        # identical, but gradients would need a custom_vjp to match PyTorch.
        prod = prod * (one_minus_delta - e * inv)
        return prod, dcg

    prod = jnp.ones_like(a_s)
    dcg = jnp.zeros((a_s.shape[0], 1), jnp.float32)

    if not rolled:
        # Small static K: unroll with compile-time 1/log2(k+2) constants.
        for k in range(K):
            prod, dcg = rank_step(prod, dcg, 1.0 / math.log2(k + 2.0))
    else:
        # Large K (e.g. K = list_len): rolled loop, denominators from SMEM.
        def body(k, carry):
            p_, d_ = carry
            return rank_step(p_, d_, invd_ref[k])
        prod, dcg = lax.fori_loop(0, K, body, (prod, dcg), unroll=2)

    ndcg = (dcg + eps) * _exact_recip(idcg_ref[...])            # (TB, 1)
    out_ref[...] = jnp.reshape(jnp.sum(1.0 - ndcg), (1, 1, 1))  # per-tile partial


def _round_up(x, m):
    return (x + m - 1) // m * m


def _choose_tile_batch(bs8, ll_p):
    # ~2 inputs x 2 pipeline buffers + ~7 live (TB, LLP) f32 temporaries per row;
    # a 24 MiB budget stays comfortable even on v7x's 64 MiB physical VMEM.
    budget = 24 * 1024 * 1024
    bytes_per_row = (2 * 2 + 7) * ll_p * 4
    tb = max(8, (budget // bytes_per_row) // 8 * 8)
    tb = min(tb, 1024, bs8)
    return int(tb)


def listwise_smoothi_ndcg_k_loss(s, label, *, alpha, delta, K=None,
                                 ndcg_loss=True, eps=DEFAULT_EPS,
                                 padded_value=PADDED_Y_VALUE):
    s = jnp.asarray(s, jnp.float32)
    label = jnp.asarray(label, jnp.float32)
    bs, ll = s.shape
    if K is None:                      # update_K path: K = rank list length
        K = ll
    K = int(K)

    # --- pad list_len to a lane-dense multiple of 128 (extra cols = padded docs)
    ll_p = _round_up(max(ll, 128), 128)
    if ll_p != ll:
        s = jnp.pad(s, ((0, 0), (0, ll_p - ll)))
        label = jnp.pad(label, ((0, 0), (0, ll_p - ll)),
                        constant_values=padded_value)

    # --- pad batch to a multiple of the batch tile; extra rows have all-zero
    #     labels -> dcg == idcg -> ndcg == 1 -> ~zero contribution to sum(1-ndcg)
    bs8 = _round_up(bs, 8)
    tb = _choose_tile_batch(bs8, ll_p)
    bs_p = _round_up(bs8, tb)
    if bs_p != bs:
        s = jnp.pad(s, ((0, bs_p - bs), (0, 0)))
        label = jnp.pad(label, ((0, bs_p - bs), (0, 0)))
    num_tiles = bs_p // tb

    # --- IDCG hoisted out of the kernel (ideal_rank + discounted_cum_gain).
    # TODO(synk): descending sort has no clean in-kernel Pallas equivalent.
    inv_denom = 1.0 / jnp.log2(jnp.arange(2.0, K + 2.0, dtype=jnp.float32))
    label_m = jnp.where(label == padded_value, -jnp.inf, label)
    sorted_label = jnp.sort(label_m, axis=-1)[:, ::-1][:, :K]
    idcg = jnp.sum(jnp.exp2(sorted_label) * inv_denom, axis=-1,
                   keepdims=True) + eps                          # (bs_p, 1)

    rolled = K > _UNROLL_MAX_K
    kernel = functools.partial(
        _smoothi_ndcg_kernel, alpha=float(alpha), delta=float(delta), K=K,
        eps=float(eps), padded_value=float(padded_value), rolled=rolled)

    in_specs = [
        pl.BlockSpec((tb, ll_p), lambda i: (i, 0)),              # scores
        pl.BlockSpec((tb, ll_p), lambda i: (i, 0)),              # labels
        pl.BlockSpec((tb, 1), lambda i: (i, 0)),                 # idcg
    ]
    args = [s, label, idcg]
    if rolled:
        in_specs.append(pl.BlockSpec(memory_space=pltpu.MemorySpace.SMEM))
        args.append(inv_denom)                                   # 1/log2(k+2)

    tile_bytes = (2 * 2 + 7) * tb * ll_p * 4 + 4 * tb * 4
    vmem_limit = int(min(56 * 2 ** 20, max(16 * 2 ** 20, 2 * tile_bytes)))

    cost = pl.CostEstimate(
        flops=int(10 * K * bs_p * ll_p),
        transcendentals=int(K * bs_p * (ll_p + 2)),
        bytes_accessed=int(4 * (2 * bs_p * ll_p + 2 * bs_p + num_tiles + K)))

    partials = pl.pallas_call(
        kernel,
        out_shape=jax.ShapeDtypeStruct((num_tiles, 1, 1), jnp.float32),
        grid=(num_tiles,),
        in_specs=in_specs,
        out_specs=pl.BlockSpec((1, 1, 1), lambda i: (i, 0, 0)),
        compiler_params=pltpu.CompilerParams(
            dimension_semantics=("parallel",),
            vmem_limit_bytes=vmem_limit),
        cost_estimate=cost,
    )(*args)

    loss = jnp.sum(partials)          # sum over queries of (1 - ndcg)
    if ndcg_loss:
        return loss
    return jnp.float32(bs) - loss     # sum(ndcg) over the original bs queries


def _reference_loss(s, label, *, alpha, delta, K, eps=DEFAULT_EPS,
                    padded_value=PADDED_Y_VALUE, ndcg_loss=True):
    """Pure-JAX reference mirroring the PyTorch forward (no padded entries)."""
    s = jnp.asarray(s, jnp.float32)
    label = jnp.asarray(label, jnp.float32)
    mask = label == padded_value
    s = jnp.where(mask, -jnp.inf, s)
    label = jnp.where(mask, -jnp.inf, label)
    s = s - jnp.min(s, axis=-1, keepdims=True)
    prod = jnp.ones_like(s)
    rels = []
    for _ in range(K):
        B = alpha * s * prod
        p = jax.nn.softmax(B, axis=-1)
        rels.append(jnp.sum(label * p, axis=-1))
        prod = prod * (1.0 - p - delta)
    rel_k = jnp.stack(rels, axis=-1)                      # (bs, K)
    denom = jnp.log2(jnp.arange(2.0, K + 2.0, dtype=jnp.float32))
    dcg = jnp.sum(_pow2(rel_k) / denom, axis=-1) + eps
    sorted_label = jnp.sort(label, axis=-1)[:, ::-1][:, :K]
    idcg = jnp.sum(_pow2(sorted_label) / denom, axis=-1) + eps
    ndcg = dcg / idcg
    return jnp.sum(1.0 - ndcg) if ndcg_loss else jnp.sum(ndcg)


if __name__ == "__main__":
    key = jax.random.PRNGKey(0)
    k1, k2, k3, k4, k5, k6 = jax.random.split(key, 6)
    alpha, delta = 2.0, 0.05

    # Case 1: batch=4 queries, list_len=16 docs, K=8, no padded entries.
    bs, ll, K = 4, 16, 8
    s = jax.random.normal(k1, (bs, ll), dtype=jnp.float32)
    label = jax.random.randint(k2, (bs, ll), 0, 5).astype(jnp.float32)
    loss = jax.block_until_ready(
        listwise_smoothi_ndcg_k_loss(s, label, alpha=alpha, delta=delta, K=K))
    ref = jax.block_until_ready(
        _reference_loss(s, label, alpha=alpha, delta=delta, K=K))
    assert jnp.isfinite(loss), f"non-finite loss: {loss}"
    assert jnp.allclose(loss, ref, rtol=5e-4, atol=1e-5), (loss, ref)

    # Case 2: odd shapes exercising lane + batch padding (bs=5, ll=40, K=10).
    bs2, ll2, K2 = 5, 40, 10
    s2 = jax.random.normal(k3, (bs2, ll2), dtype=jnp.float32)
    label2 = jax.random.randint(k4, (bs2, ll2), 0, 5).astype(jnp.float32)
    loss2 = jax.block_until_ready(
        listwise_smoothi_ndcg_k_loss(s2, label2, alpha=alpha, delta=delta, K=K2))
    ref2 = jax.block_until_ready(
        _reference_loss(s2, label2, alpha=alpha, delta=delta, K=K2))
    assert jnp.isfinite(loss2), f"non-finite loss: {loss2}"
    assert jnp.allclose(loss2, ref2, rtol=5e-4, atol=1e-4), (loss2, ref2)

    # Case 3: update_K path (K = None -> K = list_len = 24 > 16) exercising the
    # rolled fori_loop + SMEM denominators.
    bs3, ll3 = 3, 24
    s3 = jax.random.normal(k5, (bs3, ll3), dtype=jnp.float32)
    label3 = jax.random.randint(k6, (bs3, ll3), 0, 5).astype(jnp.float32)
    loss3 = jax.block_until_ready(
        listwise_smoothi_ndcg_k_loss(s3, label3, alpha=alpha, delta=delta, K=None))
    ref3 = jax.block_until_ready(
        _reference_loss(s3, label3, alpha=alpha, delta=delta, K=ll3))
    assert jnp.isfinite(loss3), f"non-finite loss: {loss3}"
    assert jnp.allclose(loss3, ref3, rtol=1e-3, atol=1e-4), (loss3, ref3)

    # ndcg_loss=False branch: sum(ndcg) == bs - sum(1 - ndcg).
    ndcg_sum = jax.block_until_ready(
        listwise_smoothi_ndcg_k_loss(s, label, alpha=alpha, delta=delta, K=K,
                                     ndcg_loss=False))
    assert jnp.allclose(ndcg_sum, bs - loss, rtol=1e-5, atol=1e-5)

    print("KERNEL_OK")
</pallas_src>

<mosaic_0001>
module attributes {stable_mosaic.version = 11 : i64} {
  func.func @_smoothi_ndcg_kernel(%arg0: i32, %arg1: memref<8x128xf32, #tpu.memory_space<vmem>>, %arg2: memref<8x128xf32, #tpu.memory_space<vmem>>, %arg3: memref<8x1xf32, #tpu.memory_space<vmem>>, %arg4: memref<1x1x1xf32, #tpu.memory_space<vmem>>) attributes {dimension_semantics = [#tpu.dimension_semantics<parallel>], iteration_bounds = array<i64: 1>, scalar_prefetch = 0 : i64, scratch_operands = 0 : i64, tpu.core_type = #tpu.core_type<tc>, window_params = [{transform_indices = @transform_0, window_bounds = array<i64: 8, 128>}, {transform_indices = @transform_1, window_bounds = array<i64: 8, 128>}, {transform_indices = @transform_2, window_bounds = array<i64: 8, 1>}, {transform_indices = @transform_3, window_bounds = array<i64: 1, 1, 1>}]} {
    %c0 = arith.constant 0 : index
    %c0_0 = arith.constant 0 : index
    %0 = vector.load %arg1[%c0, %c0_0] : memref<8x128xf32, #tpu.memory_space<vmem>>, vector<8x128xf32>
    %c0_1 = arith.constant 0 : index
    %c0_2 = arith.constant 0 : index
    %1 = vector.load %arg2[%c0_1, %c0_2] : memref<8x128xf32, #tpu.memory_space<vmem>>, vector<8x128xf32>
    %cst = arith.constant -1.000000e+00 : f32
    %2 = vector.broadcast %cst : f32 to vector<8x128xf32>
    %3 = arith.cmpf oeq, %1, %2 : vector<8x128xf32>
    %cst_3 = arith.constant 3.40282347E+38 : f32
    %4 = vector.broadcast %cst_3 : f32 to vector<8x128xf32>
    %5 = arith.select %3, %4, %0 : vector<8x128xi1>, vector<8x128xf32>
    %cst_4 = arith.constant dense<0x7F800000> : vector<8xf32>
    %6 = vector.multi_reduction <minimumf>, %5, %cst_4 [1] : vector<8x128xf32> to vector<8xf32>
    %7 = vector.shape_cast %6 : vector<8xf32> to vector<8x1xf32>
    %8 = vector.broadcast %7 : vector<8x1xf32> to vector<8x128xf32>
    %9 = arith.subf %0, %8 : vector<8x128xf32>
    %cst_5 = arith.constant 2.000000e+00 : f32
    %10 = vector.broadcast %cst_5 : f32 to vector<8x128xf32>
    %11 = arith.mulf %9, %10 : vector<8x128xf32>
    %cst_6 = arith.constant 0.000000e+00 : f32
    %12 = vector.broadcast %cst_6 : f32 to vector<8x128xf32>
    %13 = arith.select %3, %12, %11 : vector<8x128xi1>, vector<8x128xf32>
    %cst_7 = arith.constant 0.000000e+00 : f32
    %14 = vector.broadcast %cst_7 : f32 to vector<8x128xf32>
    %15 = arith.select %3, %14, %1 : vector<8x128xi1>, vector<8x128xf32>
    %cst_8 = arith.constant -1.000000e+30 : f32
    %cst_9 = arith.constant 0.000000e+00 : f32
    %16 = vector.broadcast %cst_8 : f32 to vector<8x128xf32>
    %17 = vector.broadcast %cst_9 : f32 to vector<8x128xf32>
    %18 = arith.select %3, %16, %17 : vector<8x128xi1>, vector<8x128xf32>
    %cst_10 = arith.constant 1.000000e+00 : f32
    %19 = vector.broadcast %cst_10 : f32 to vector<8x128xf32>
    %cst_11 = arith.constant 0.000000e+00 : f32
    %20 = vector.broadcast %cst_11 : f32 to vector<8x1xf32>
    %21 = arith.mulf %13, %19 : vector<8x128xf32>
    %22 = arith.addf %21, %18 : vector<8x128xf32>
    %cst_12 = arith.constant dense<0xFF800000> : vector<8xf32>
    %23 = vector.multi_reduction <maximumf>, %22, %cst_12 [1] : vector<8x128xf32> to vector<8xf32>
    %24 = vector.shape_cast %23 : vector<8xf32> to vector<8x1xf32>
    %25 = vector.broadcast %24 : vector<8x1xf32> to vector<8x128xf32>
    %26 = arith.subf %22, %25 : vector<8x128xf32>
    %27 = math.exp %26 : vector<8x128xf32>
    %cst_13 = arith.constant dense<0.000000e+00> : vector<8xf32>
    %28 = vector.multi_reduction <add>, %27, %cst_13 [1] : vector<8x128xf32> to vector<8xf32>
    %29 = vector.shape_cast %28 : vector<8xf32> to vector<8x1xf32>
    %30 = arith.mulf %15, %27 : vector<8x128xf32>
    %cst_14 = arith.constant dense<0.000000e+00> : vector<8xf32>
    %31 = vector.multi_reduction <add>, %30, %cst_14 [1] : vector<8x128xf32> to vector<8xf32>
    %32 = vector.shape_cast %31 : vector<8xf32> to vector<8x1xf32>
    %33 = tpu.reciprocal %29 {approx = true} : vector<8x1xf32> -> vector<8x1xf32>
    %34 = arith.mulf %29, %33 : vector<8x1xf32>
    %cst_15 = arith.constant 2.000000e+00 : f32
    %35 = vector.broadcast %cst_15 : f32 to vector<8x1xf32>
    %36 = arith.subf %35, %34 : vector<8x1xf32>
    %37 = arith.mulf %33, %36 : vector<8x1xf32>
    %38 = arith.mulf %32, %37 : vector<8x1xf32>
    %cst_16 = arith.constant 0.693147182 : f32
    %39 = vector.broadcast %cst_16 : f32 to vector<8x1xf32>
    %40 = arith.mulf %38, %39 : vector<8x1xf32>
    %41 = math.exp %40 : vector<8x1xf32>
    %cst_17 = arith.constant 1.000000e+00 : f32
    %42 = vector.broadcast %cst_17 : f32 to vector<8x1xf32>
    %43 = arith.mulf %41, %42 : vector<8x1xf32>
    %44 = arith.addf %20, %43 : vector<8x1xf32>
    %45 = vector.broadcast %37 : vector<8x1xf32> to vector<8x128xf32>
    %46 = arith.mulf %27, %45 : vector<8x128xf32>
    %cst_18 = arith.constant 0.949999988 : f32
    %47 = vector.broadcast %cst_18 : f32 to vector<8x128xf32>
    %48 = arith.subf %47, %46 : vector<8x128xf32>
    %49 = arith.mulf %19, %48 : vector<8x128xf32>
    %50 = arith.mulf %13, %49 : vector<8x128xf32>
    %51 = arith.addf %50, %18 : vector<8x128xf32>
    %cst_19 = arith.constant dense<0xFF800000> : vector<8xf32>
    %52 = vector.multi_reduction <maximumf>, %51, %cst_19 [1] : vector<8x128xf32> to vector<8xf32>
    %53 = vector.shape_cast %52 : vector<8xf32> to vector<8x1xf32>
    %54 = vector.broadcast %53 : vector<8x1xf32> to vector<8x128xf32>
    %55 = arith.subf %51, %54 : vector<8x128xf32>
    %56 = math.exp %55 : vector<8x128xf32>
    %cst_20 = arith.constant dense<0.000000e+00> : vector<8xf32>
    %57 = vector.multi_reduction <add>, %56, %cst_20 [1] : vector<8x128xf32> to vector<8xf32>
    %58 = vector.shape_cast %57 : vector<8xf32> to vector<8x1xf32>
    %59 = arith.mulf %15, %56 : vector<8x128xf32>
    %cst_21 = arith.constant dense<0.000000e+00> : vector<8xf32>
    %60 = vector.multi_reduction <add>, %59, %cst_21 [1] : vector<8x128xf32> to vector<8xf32>
    %61 = vector.shape_cast %60 : vector<8xf32> to vector<8x1xf32>
    %62 = tpu.reciprocal %58 {approx = true} : vector<8x1xf32> -> vector<8x1xf32>
    %63 = arith.mulf %58, %62 : vector<8x1xf32>
    %cst_22 = arith.constant 2.000000e+00 : f32
    %64 = vector.broadcast %cst_22 : f32 to vector<8x1xf32>
    %65 = arith.subf %64, %63 : vector<8x1xf32>
    %66 = arith.mulf %62, %65 : vector<8x1xf32>
    %67 = arith.mulf %61, %66 : vector<8x1xf32>
    %cst_23 = arith.constant 0.693147182 : f32
    %68 = vector.broadcast %cst_23 : f32 to vector<8x1xf32>
    %69 = arith.mulf %67, %68 : vector<8x1xf32>
    %70 = math.exp %69 : vector<8x1xf32>
    %cst_24 = arith.constant 0.630929768 : f32
    %71 = vector.broadcast %cst_24 : f32 to vector<8x1xf32>
    %72 = arith.mulf %70, %71 : vector<8x1xf32>
    %73 = arith.addf %44, %72 : vector<8x1xf32>
    %74 = vector.broadcast %66 : vector<8x1xf32> to vector<8x128xf32>
    %75 = arith.mulf %56, %74 : vector<8x128xf32>
    %cst_25 = arith.constant 0.949999988 : f32
    %76 = vector.broadcast %cst_25 : f32 to vector<8x128xf32>
    %77 = arith.subf %76, %75 : vector<8x128xf32>
    %78 = arith.mulf %49, %77 : vector<8x128xf32>
    %79 = arith.mulf %13, %78 : vector<8x128xf32>
    %80 = arith.addf %79, %18 : vector<8x128xf32>
    %cst_26 = arith.constant dense<0xFF800000> : vector<8xf32>
    %81 = vector.multi_reduction <maximumf>, %80, %cst_26 [1] : vector<8x128xf32> to vector<8xf32>
    %82 = vector.shape_cast %81 : vector<8xf32> to vector<8x1xf32>
    %83 = vector.broadcast %82 : vector<8x1xf32> to vector<8x128xf32>
    %84 = arith.subf %80, %83 : vector<8x128xf32>
    %85 = math.exp %84 : vector<8x128xf32>
    %cst_27 = arith.constant dense<0.000000e+00> : vector<8xf32>
    %86 = vector.multi_reduction <add>, %85, %cst_27 [1] : vector<8x128xf32> to vector<8xf32>
    %87 = vector.shape_cast %86 : vector<8xf32> to vector<8x1xf32>
    %88 = arith.mulf %15, %85 : vector<8x128xf32>
    %cst_28 = arith.constant dense<0.000000e+00> : vector<8xf32>
    %89 = vector.multi_reduction <add>, %88, %cst_28 [1] : vector<8x128xf32> to vector<8xf32>
    %90 = vector.shape_cast %89 : vector<8xf32> to vector<8x1xf32>
    %91 = tpu.reciprocal %87 {approx = true} : vector<8x1xf32> -> vector<8x1xf32>
    %92 = arith.mulf %87, %91 : vector<8x1xf32>
    %cst_29 = arith.constant 2.000000e+00 : f32
    %93 = vector.broadcast %cst_29 : f32 to vector<8x1xf32>
    %94 = arith.subf %93, %92 : vector<8x1xf32>
    %95 = arith.mulf %91, %94 : vector<8x1xf32>
    %96 = arith.mulf %90, %95 : vector<8x1xf32>
    %cst_30 = arith.constant 0.693147182 : f32
    %97 = vector.broadcast %cst_30 : f32 to vector<8x1xf32>
    %98 = arith.mulf %96, %97 : vector<8x1xf32>
    %99 = math.exp %98 : vector<8x1xf32>
    %cst_31 = arith.constant 5.000000e-01 : f32
    %100 = vector.broadcast %cst_31 : f32 to vector<8x1xf32>
    %101 = arith.mulf %99, %100 : vector<8x1xf32>
    %102 = arith.addf %73, %101 : vector<8x1xf32>
    %103 = vector.broadcast %95 : vector<8x1xf32> to vector<8x128xf32>
    %104 = arith.mulf %85, %103 : vector<8x128xf32>
    %cst_32 = arith.constant 0.949999988 : f32
    %105 = vector.broadcast %cst_32 : f32 to vector<8x128xf32>
    %106 = arith.subf %105, %104 : vector<8x128xf32>
    %107 = arith.mulf %78, %106 : vector<8x128xf32>
    %108 = arith.mulf %13, %107 : vector<8x128xf32>
    %109 = arith.addf %108, %18 : vector<8x128xf32>
    %cst_33 = arith.constant dense<0xFF800000> : vector<8xf32>
    %110 = vector.multi_reduction <maximumf>, %109, %cst_33 [1] : vector<8x128xf32> to vector<8xf32>
    %111 = vector.shape_cast %110 : vector<8xf32> to vector<8x1xf32>
    %112 = vector.broadcast %111 : vector<8x1xf32> to vector<8x128xf32>
    %113 = arith.subf %109, %112 : vector<8x128xf32>
    %114 = math.exp %113 : vector<8x128xf32>
    %cst_34 = arith.constant dense<0.000000e+00> : vector<8xf32>
    %115 = vector.multi_reduction <add>, %114, %cst_34 [1] : vector<8x128xf32> to vector<8xf32>
    %116 = vector.shape_cast %115 : vector<8xf32> to vector<8x1xf32>
    %117 = arith.mulf %15, %114 : vector<8x128xf32>
    %cst_35 = arith.constant dense<0.000000e+00> : vector<8xf32>
    %118 = vector.multi_reduction <add>, %117, %cst_35 [1] : vector<8x128xf32> to vector<8xf32>
    %119 = vector.shape_cast %118 : vector<8xf32> to vector<8x1xf32>
    %120 = tpu.reciprocal %116 {approx = true} : vector<8x1xf32> -> vector<8x1xf32>
    %121 = arith.mulf %116, %120 : vector<8x1xf32>
    %cst_36 = arith.constant 2.000000e+00 : f32
    %122 = vector.broadcast %cst_36 : f32 to vector<8x1xf32>
    %123 = arith.subf %122, %121 : vector<8x1xf32>
    %124 = arith.mulf %120, %123 : vector<8x1xf32>
    %125 = arith.mulf %119, %124 : vector<8x1xf32>
    %cst_37 = arith.constant 0.693147182 : f32
    %126 = vector.broadcast %cst_37 : f32 to vector<8x1xf32>
    %127 = arith.mulf %125, %126 : vector<8x1xf32>
    %128 = math.exp %127 : vector<8x1xf32>
    %cst_38 = arith.constant 0.43067655 : f32
    %129 = vector.broadcast %cst_38 : f32 to vector<8x1xf32>
    %130 = arith.mulf %128, %129 : vector<8x1xf32>
    %131 = arith.addf %102, %130 : vector<8x1xf32>
    %132 = vector.broadcast %124 : vector<8x1xf32> to vector<8x128xf32>
    %133 = arith.mulf %114, %132 : vector<8x128xf32>
    %cst_39 = arith.constant 0.949999988 : f32
    %134 = vector.broadcast %cst_39 : f32 to vector<8x128xf32>
    %135 = arith.subf %134, %133 : vector<8x128xf32>
    %136 = arith.mulf %107, %135 : vector<8x128xf32>
    %137 = arith.mulf %13, %136 : vector<8x128xf32>
    %138 = arith.addf %137, %18 : vector<8x128xf32>
    %cst_40 = arith.constant dense<0xFF800000> : vector<8xf32>
    %139 = vector.multi_reduction <maximumf>, %138, %cst_40 [1] : vector<8x128xf32> to vector<8xf32>
    %140 = vector.shape_cast %139 : vector<8xf32> to vector<8x1xf32>
    %141 = vector.broadcast %140 : vector<8x1xf32> to vector<8x128xf32>
    %142 = arith.subf %138, %141 : vector<8x128xf32>
    %143 = math.exp %142 : vector<8x128xf32>
    %cst_41 = arith.constant dense<0.000000e+00> : vector<8xf32>
    %144 = vector.multi_reduction <add>, %143, %cst_41 [1] : vector<8x128xf32> to vector<8xf32>
    %145 = vector.shape_cast %144 : vector<8xf32> to vector<8x1xf32>
    %146 = arith.mulf %15, %143 : vector<8x128xf32>
    %cst_42 = arith.constant dense<0.000000e+00> : vector<8xf32>
    %147 = vector.multi_reduction <add>, %146, %cst_42 [1] : vector<8x128xf32> to vector<8xf32>
    %148 = vector.shape_cast %147 : vector<8xf32> to vector<8x1xf32>
    %149 = tpu.reciprocal %145 {approx = true} : vector<8x1xf32> -> vector<8x1xf32>
    %150 = arith.mulf %145, %149 : vector<8x1xf32>
    %cst_43 = arith.constant 2.000000e+00 : f32
    %151 = vector.broadcast %cst_43 : f32 to vector<8x1xf32>
    %152 = arith.subf %151, %150 : vector<8x1xf32>
    %153 = arith.mulf %149, %152 : vector<8x1xf32>
    %154 = arith.mulf %148, %153 : vector<8x1xf32>
    %cst_44 = arith.constant 0.693147182 : f32
    %155 = vector.broadcast %cst_44 : f32 to vector<8x1xf32>
    %156 = arith.mulf %154, %155 : vector<8x1xf32>
    %157 = math.exp %156 : vector<8x1xf32>
    %cst_45 = arith.constant 0.386852801 : f32
    %158 = vector.broadcast %cst_45 : f32 to vector<8x1xf32>
    %159 = arith.mulf %157, %158 : vector<8x1xf32>
    %160 = arith.addf %131, %159 : vector<8x1xf32>
    %161 = vector.broadcast %153 : vector<8x1xf32> to vector<8x128xf32>
    %162 = arith.mulf %143, %161 : vector<8x128xf32>
    %cst_46 = arith.constant 0.949999988 : f32
    %163 = vector.broadcast %cst_46 : f32 to vector<8x128xf32>
    %164 = arith.subf %163, %162 : vector<8x128xf32>
    %165 = arith.mulf %136, %164 : vector<8x128xf32>
    %166 = arith.mulf %13, %165 : vector<8x128xf32>
    %167 = arith.addf %166, %18 : vector<8x128xf32>
    %cst_47 = arith.constant dense<0xFF800000> : vector<8xf32>
    %168 = vector.multi_reduction <maximumf>, %167, %cst_47 [1] : vector<8x128xf32> to vector<8xf32>
    %169 = vector.shape_cast %168 : vector<8xf32> to vector<8x1xf32>
    %170 = vector.broadcast %169 : vector<8x1xf32> to vector<8x128xf32>
    %171 = arith.subf %167, %170 : vector<8x128xf32>
    %172 = math.exp %171 : vector<8x128xf32>
    %cst_48 = arith.constant dense<0.000000e+00> : vector<8xf32>
    %173 = vector.multi_reduction <add>, %172, %cst_48 [1] : vector<8x128xf32> to vector<8xf32>
    %174 = vector.shape_cast %173 : vector<8xf32> to vector<8x1xf32>
    %175 = arith.mulf %15, %172 : vector<8x128xf32>
    %cst_49 = arith.constant dense<0.000000e+00> : vector<8xf32>
    %176 = vector.multi_reduction <add>, %175, %cst_49 [1] : vector<8x128xf32> to vector<8xf32>
    %177 = vector.shape_cast %176 : vector<8xf32> to vector<8x1xf32>
    %178 = tpu.reciprocal %174 {approx = true} : vector<8x1xf32> -> vector<8x1xf32>
    %179 = arith.mulf %174, %178 : vector<8x1xf32>
    %cst_50 = arith.constant 2.000000e+00 : f32
    %180 = vector.broadcast %cst_50 : f32 to vector<8x1xf32>
    %181 = arith.subf %180, %179 : vector<8x1xf32>
    %182 = arith.mulf %178, %181 : vector<8x1xf32>
    %183 = arith.mulf %177, %182 : vector<8x1xf32>
    %cst_51 = arith.constant 0.693147182 : f32
    %184 = vector.broadcast %cst_51 : f32 to vector<8x1xf32>
    %185 = arith.mulf %183, %184 : vector<8x1xf32>
    %186 = math.exp %185 : vector<8x1xf32>
    %cst_52 = arith.constant 0.356207192 : f32
    %187 = vector.broadcast %cst_52 : f32 to vector<8x1xf32>
    %188 = arith.mulf %186, %187 : vector<8x1xf32>
    %189 = arith.addf %160, %188 : vector<8x1xf32>
    %190 = vector.broadcast %182 : vector<8x1xf32> to vector<8x128xf32>
    %191 = arith.mulf %172, %190 : vector<8x128xf32>
    %cst_53 = arith.constant 0.949999988 : f32
    %192 = vector.broadcast %cst_53 : f32 to vector<8x128xf32>
    %193 = arith.subf %192, %191 : vector<8x128xf32>
    %194 = arith.mulf %165, %193 : vector<8x128xf32>
    %195 = arith.mulf %13, %194 : vector<8x128xf32>
    %196 = arith.addf %195, %18 : vector<8x128xf32>
    %cst_54 = arith.constant dense<0xFF800000> : vector<8xf32>
    %197 = vector.multi_reduction <maximumf>, %196, %cst_54 [1] : vector<8x128xf32> to vector<8xf32>
    %198 = vector.shape_cast %197 : vector<8xf32> to vector<8x1xf32>
    %199 = vector.broadcast %198 : vector<8x1xf32> to vector<8x128xf32>
    %200 = arith.subf %196, %199 : vector<8x128xf32>
    %201 = math.exp %200 : vector<8x128xf32>
    %cst_55 = arith.constant dense<0.000000e+00> : vector<8xf32>
    %202 = vector.multi_reduction <add>, %201, %cst_55 [1] : vector<8x128xf32> to vector<8xf32>
    %203 = vector.shape_cast %202 : vector<8xf32> to vector<8x1xf32>
    %204 = arith.mulf %15, %201 : vector<8x128xf32>
    %cst_56 = arith.constant dense<0.000000e+00> : vector<8xf32>
    %205 = vector.multi_reduction <add>, %204, %cst_56 [1] : vector<8x128xf32> to vector<8xf32>
    %206 = vector.shape_cast %205 : vector<8xf32> to vector<8x1xf32>
    %207 = tpu.reciprocal %203 {approx = true} : vector<8x1xf32> -> vector<8x1xf32>
    %208 = arith.mulf %203, %207 : vector<8x1xf32>
    %cst_57 = arith.constant 2.000000e+00 : f32
    %209 = vector.broadcast %cst_57 : f32 to vector<8x1xf32>
    %210 = arith.subf %209, %208 : vector<8x1xf32>
    %211 = arith.mulf %207, %210 : vector<8x1xf32>
    %212 = arith.mulf %206, %211 : vector<8x1xf32>
    %cst_58 = arith.constant 0.693147182 : f32
    %213 = vector.broadcast %cst_58 : f32 to vector<8x1xf32>
    %214 = arith.mulf %212, %213 : vector<8x1xf32>
    %215 = math.exp %214 : vector<8x1xf32>
    %cst_59 = arith.constant 0.333333343 : f32
    %216 = vector.broadcast %cst_59 : f32 to vector<8x1xf32>
    %217 = arith.mulf %215, %216 : vector<8x1xf32>
    %218 = arith.addf %189, %217 : vector<8x1xf32>
    %219 = vector.broadcast %211 : vector<8x1xf32> to vector<8x128xf32>
    %220 = arith.mulf %201, %219 : vector<8x128xf32>
    %cst_60 = arith.constant 0.949999988 : f32
    %221 = vector.broadcast %cst_60 : f32 to vector<8x128xf32>
    %222 = arith.subf %221, %220 : vector<8x128xf32>
    %223 = arith.mulf %194, %222 : vector<8x128xf32>
    %224 = arith.mulf %13, %223 : vector<8x128xf32>
    %225 = arith.addf %224, %18 : vector<8x128xf32>
    %cst_61 = arith.constant dense<0xFF800000> : vector<8xf32>
    %226 = vector.multi_reduction <maximumf>, %225, %cst_61 [1] : vector<8x128xf32> to vector<8xf32>
    %227 = vector.shape_cast %226 : vector<8xf32> to vector<8x1xf32>
    %228 = vector.broadcast %227 : vector<8x1xf32> to vector<8x128xf32>
    %229 = arith.subf %225, %228 : vector<8x128xf32>
    %230 = math.exp %229 : vector<8x128xf32>
    %cst_62 = arith.constant dense<0.000000e+00> : vector<8xf32>
    %231 = vector.multi_reduction <add>, %230, %cst_62 [1] : vector<8x128xf32> to vector<8xf32>
    %232 = vector.shape_cast %231 : vector<8xf32> to vector<8x1xf32>
    %233 = arith.mulf %15, %230 : vector<8x128xf32>
    %cst_63 = arith.constant dense<0.000000e+00> : vector<8xf32>
    %234 = vector.multi_reduction <add>, %233, %cst_63 [1] : vector<8x128xf32> to vector<8xf32>
    %235 = vector.shape_cast %234 : vector<8xf32> to vector<8x1xf32>
    %236 = tpu.reciprocal %232 {approx = true} : vector<8x1xf32> -> vector<8x1xf32>
    %237 = arith.mulf %232, %236 : vector<8x1xf32>
    %cst_64 = arith.constant 2.000000e+00 : f32
    %238 = vector.broadcast %cst_64 : f32 to vector<8x1xf32>
    %239 = arith.subf %238, %237 : vector<8x1xf32>
    %240 = arith.mulf %236, %239 : vector<8x1xf32>
    %241 = arith.mulf %235, %240 : vector<8x1xf32>
    %cst_65 = arith.constant 0.693147182 : f32
    %242 = vector.broadcast %cst_65 : f32 to vector<8x1xf32>
    %243 = arith.mulf %241, %242 : vector<8x1xf32>
    %244 = math.exp %243 : vector<8x1xf32>
    %cst_66 = arith.constant 0.315464884 : f32
    %245 = vector.broadcast %cst_66 : f32 to vector<8x1xf32>
    %246 = arith.mulf %244, %245 : vector<8x1xf32>
    %247 = arith.addf %218, %246 : vector<8x1xf32>
    %cst_67 = arith.constant 1.000000e-10 : f32
    %248 = vector.broadcast %cst_67 : f32 to vector<8x1xf32>
    %249 = arith.addf %247, %248 : vector<8x1xf32>
    %c0_68 = arith.constant 0 : index
    %c0_69 = arith.constant 0 : index
    %250 = vector.load %arg3[%c0_68, %c0_69] : memref<8x1xf32, #tpu.memory_space<vmem>>, vector<8x1xf32>
    %251 = tpu.reciprocal %250 {approx = true} : vector<8x1xf32> -> vector<8x1xf32>
    %252 = arith.mulf %250, %251 : vector<8x1xf32>
    %cst_70 = arith.constant 2.000000e+00 : f32
    %253 = vector.broadcast %cst_70 : f32 to vector<8x1xf32>
    %254 = arith.subf %253, %252 : vector<8x1xf32>
    %255 = arith.mulf %251, %254 : vector<8x1xf32>
    %256 = arith.mulf %249, %255 : vector<8x1xf32>
    %cst_71 = arith.constant 1.000000e+00 : f32
    %257 = vector.broadcast %cst_71 : f32 to vector<8x1xf32>
    %258 = arith.subf %257, %256 : vector<8x1xf32>
    %259 = vector.shape_cast %258 : vector<8x1xf32> to vector<1x8x1xf32>
    %cst_72 = arith.constant dense<0.000000e+00> : vector<1xf32>
    %260 = vector.multi_reduction <add>, %259, %cst_72 [1, 2] : vector<1x8x1xf32> to vector<1xf32>
    %261 = vector.shape_cast %260 : vector<1xf32> to vector<1x1x1xf32>
    %262 = vector.extract %261[0, 0, 0] : f32 from vector<1x1x1xf32>
    %263 = vector.broadcast %262 : f32 to vector<1x1x1xf32>
    %c0_73 = arith.constant 0 : index
    %c0_74 = arith.constant 0 : index
    %c0_75 = arith.constant 0 : index
    %264 = vector.load %arg4[%c0_73, %c0_74, %c0_75] : memref<1x1x1xf32, #tpu.memory_space<vmem>>, vector<1x1x1xf32>
    tpu.vector_store %arg4[%c0_73, %c0_74, %c0_75], %263 {strides = array<i32>} : memref<1x1x1xf32, #tpu.memory_space<vmem>>, vector<1x1x1xf32>,
    return
  }
  func.func @transform_0(%arg0: i32) -> (i32, i32) {
    %c0_i32 = arith.constant 0 : i32
    %c0_i32_0 = arith.constant 0 : i32
    return %arg0, %c0_i32 : i32, i32
  }
  func.func @transform_1(%arg0: i32) -> (i32, i32) {
    %c0_i32 = arith.constant 0 : i32
    %c0_i32_0 = arith.constant 0 : i32
    return %arg0, %c0_i32 : i32, i32
  }
  func.func @transform_2(%arg0: i32) -> (i32, i32) {
    %c0_i32 = arith.constant 0 : i32
    %c0_i32_0 = arith.constant 0 : i32
    return %arg0, %c0_i32 : i32, i32
  }
  func.func @transform_3(%arg0: i32) -> (i32, i32, i32) {
    %c0_i32 = arith.constant 0 : i32
    %c0_i32_0 = arith.constant 0 : i32
    %c0_i32_1 = arith.constant 0 : i32
    return %arg0, %c0_i32, %c0_i32_0 : i32, i32, i32
  }
}

</mosaic_0001>

<bundles_post_ra>
// kernel: tpu_custom_call.1
= control target key start
LH: loop header
LB: loop body
LE: loop exit
PB: predicated region body
PF: predicated region fallthrough
CT: control target
= control target key end

     0   :  { %8 = vsyncpa [#allocation3], 0  ;;  %s486_s0 = inlined_call_operand.vmem [shape: f32[8,128], index: 0, kind: input, shape index: {}]   ;;  %s487_s1 = inlined_call_operand.hbm [shape: f32[8,128], index: 1, kind: input, shape index: {}]   ;;  %s488_s2 = inlined_call_operand.vmem [shape: f32[8,1], index: 2, kind: input, shape index: {}]   ;;  %s489_s3 = inlined_call_operand.hbm [shape: f32[1,1,1], index: 3, kind: output, shape index: {}]  }
   0x1   :  { %9 = vsyncpa [#allocation4], 0  ;;  %s17_s14 = sshll.u32 %s487_s1, 4  ;;  %s380_s15 = smov [#allocation2]   ;;  %s18_s14 = int_to_ptr.hbm [resolvable:$true] %s17_s14 }
   0x2   :  { %s19_s16 = sshll.u32 %s380_s15, 4  ;;  %s20_s16 = int_to_ptr.vmem [resolvable:$true] %s19_s16 }
   0x3   :  { %22 = dma.hbm_to_vmem [thread:$0]  %s18_s14, 128, %s20_s16, [#allocation3]  }
   0x4   :  { %376 = dma.done.wait [#allocation3], 128  }
   0x5   :  { %377 = vsyncadd [#allocation3], 4294967168  ;;  %v29_v0 = vld [vmem:[%s486_s0] sm:$0xff]  ;;  %v381_v5 = vmov 0.0   ;;  %vm242_vm1 = vcmask 7168   ;;  %s263_s22 = sshll.u32 %s489_s3, 4  ;;  %s264_s22 = int_to_ptr.hbm [resolvable:$true] %s263_s22 }
   0x6   :  { %v409_v1 = vld [vmem:[#allocation2] sm:$0xff]  ;;  %vm254_vm2 = vcmask 0  }
   0x7   :  { %vm31_vm0 = vcmp.eq.f32.partialorder %v409_v1, -1.0 }
   0x8   :  { %v32_v2 = vsel %vm31_vm0, 3.4028235e+38, %v29_v0  ;;  %v416_v6 = vsel %vm31_vm0, -1e+30, %v381_v5 }
   0x9   :  { %33 = vmin.xlane.f32.xlu0 %v32_v2 }
  0x7c   :  { %v34_v3 = vpop.xlane.xlu0 %33 }
  0x7d   :  { %v35_v4 = vsub.f32 %v29_v0, %v34_v3 }
  0x7f   :  { %v36_v7 = vmul.f32 2.0, %v35_v4 }
  0x81   :  { %v420_v8 = vsel %vm31_vm0, 0.0, %v36_v7 }
  0x82   :  { %v40_v9 = vadd.f32 %v416_v6, %v420_v8 }
  0x84   :  { %41 = vmax.xlane.f32.xlu0 %v40_v9 }
  0xf7   :  { %v42_v10 = vpop.xlane.xlu0 %41 }
  0xf8   :  { %v43_v11 = vsub.f32 %v40_v9, %v42_v10 }
  0xfa   :  { %v44_v12 = vmul.f32 1.442695, %v43_v11 }
  0xfc   :  { %278 = vpow2.f32 %v44_v12 }
 0x102   :  { %v424_v13 = vpop.eup %278 }
 0x103   :  { %46 = vadd.xlane.f32.xlu1 %v424_v13 }
 0x176   :  { %v47_v14 = vpop.xlane.xlu1 %46 }
 0x177   :  { %280 = vrcp.f32 %v47_v14 }
 0x17d   :  { %v281_v15 = vpop.eup %280 }
 0x17e   :  { %v52_v16 = vmul.f32 %v281_v15, %v47_v14 }
 0x180   :  { %v53_v17 = vsub.f32 2.0, %v52_v16 }
 0x182   :  { %v427_v18 = vmul.f32 %v281_v15, %v53_v17 }
 0x184   :  { %v60_v19 = vmul.f32 %v424_v13, %v427_v18 }
 0x186   :  { %v61_v20 = vsub.f32 0.95, %v60_v19 }
 0x188   :  { %v62_v21 = vmul.f32 %v61_v20, %v420_v8 }
 0x18a   :  { %v63_v22 = vadd.f32 %v62_v21, %v416_v6 }
 0x18c   :  { %64 = vmax.xlane.f32.xlu1 %v63_v22 }
 0x1ff   :  { %v65_v23 = vpop.xlane.xlu1 %64 }
 0x200   :  { %v66_v24 = vsub.f32 %v63_v22, %v65_v23 }
 0x202   :  { %v67_v25 = vmul.f32 1.442695, %v66_v24 }
 0x204   :  { %282 = vpow2.f32 %v67_v25 }
 0x20a   :  { %v433_v26 = vpop.eup %282 }
 0x20b   :  { %69 = vadd.xlane.f32.xlu2 %v433_v26 }
 0x27e   :  { %v70_v27 = vpop.xlane.xlu2 %69 }
 0x27f   :  { %284 = vrcp.f32 %v70_v27 }
 0x285   :  { %v285_v28 = vpop.eup %284 }
 0x286   :  { %v75_v29 = vmul.f32 %v285_v28, %v70_v27 }
 0x288   :  { %v76_v30 = vsub.f32 2.0, %v75_v29 }
 0x28a   :  { %v436_v31 = vmul.f32 %v285_v28, %v76_v30 }
 0x28c   :  { %v84_v32 = vmul.f32 %v433_v26, %v436_v31 }
 0x28e   :  { %v85_v33 = vsub.f32 0.95, %v84_v32 }
 0x290   :  { %v86_v34 = vmul.f32 %v85_v33, %v61_v20 }
 0x292   :  { %v87_v35 = vmul.f32 %v86_v34, %v420_v8 }
 0x294   :  { %v88_v36 = vadd.f32 %v87_v35, %v416_v6 }
 0x296   :  { %89 = vmax.xlane.f32.xlu2 %v88_v36 }
 0x309   :  { %v90_v37 = vpop.xlane.xlu2 %89 }
 0x30a   :  { %v91_v38 = vsub.f32 %v88_v36, %v90_v37 }
 0x30c   :  { %v92_v39 = vmul.f32 1.442695, %v91_v38 }
 0x30e   :  { %286 = vpow2.f32 %v92_v39 }
 0x314   :  { %v442_v40 = vpop.eup %286 }
 0x315   :  { %94 = vadd.xlane.f32.xlu0 %v442_v40 }
 0x388   :  { %v95_v41 = vpop.xlane.xlu0 %94 }
 0x389   :  { %288 = vrcp.f32 %v95_v41 }
 0x38f   :  { %v289_v42 = vpop.eup %288 }
 0x390   :  { %v100_v43 = vmul.f32 %v289_v42, %v95_v41  ;;  %v38_v41 = vsel %vm31_vm0, 0.0, %v409_v1 }
 0x392   :  { %v101_v44 = vsub.f32 2.0, %v100_v43 }
 0x394   :  { %v445_v45 = vmul.f32 %v289_v42, %v101_v44  ;;  %v71_v42 = vmul.f32 %v433_v26, %v38_v41  ;;  %v48_v26 = vmul.f32 %v424_v13, %v38_v41 }
 0x396   :  { %v109_v46 = vmul.f32 %v442_v40, %v445_v45 }
 0x398   :  { %v110_v47 = vsub.f32 0.95, %v109_v46 }
 0x39a   :  { %v111_v48 = vmul.f32 %v110_v47, %v86_v34 }
 0x39c   :  { %v112_v49 = vmul.f32 %v111_v48, %v420_v8 }
 0x39e   :  { %v113_v50 = vadd.f32 %v112_v49, %v416_v6 }
 0x3a0   :  { %114 = vmax.xlane.f32.xlu1 %v113_v50 }
 0x413   :  { %v115_v51 = vpop.xlane.xlu1 %114 }
 0x414   :  { %v116_v52 = vsub.f32 %v113_v50, %v115_v51 }
 0x416   :  { %v117_v53 = vmul.f32 1.442695, %v116_v52 }
 0x418   :  { %290 = vpow2.f32 %v117_v53 }
 0x41e   :  { %v291_v54 = vpop.eup %290 }
 0x41f   :  { %119 = vadd.xlane.f32.xlu2 %v291_v54  ;;  %v121_v43 = vmul.f32 %v291_v54, %v38_v41 }
 0x492   :  { %v120_v55 = vpop.xlane.xlu2 %119 }
 0x493   :  { %292 = vrcp.f32 %v120_v55 }
 0x499   :  { %v293_v56 = vpop.eup %292 }
 0x49a   :  { %v125_v57 = vmul.f32 %v293_v56, %v120_v55 }
 0x49c   :  { %v126_v58 = vsub.f32 2.0, %v125_v57 }
 0x49e   :  { %v451_v59 = vmul.f32 %v293_v56, %v126_v58 }
 0x4a0   :  { %v134_v60 = vmul.f32 %v291_v54, %v451_v59 }
 0x4a2   :  { %v135_v61 = vsub.f32 0.95, %v134_v60 }
 0x4a4   :  { %v136_v62 = vmul.f32 %v135_v61, %v111_v48 }
 0x4a6   :  { %v137_v63 = vmul.f32 %v136_v62, %v420_v8 }
 0x4a8   :  { %v138_v0 = vadd.f32 %v137_v63, %v416_v6 }
 0x4aa   :  { %139 = vmax.xlane.f32.xlu0 %v138_v0 }
 0x51d   :  { %v140_v2 = vpop.xlane.xlu0 %139 }
 0x51e   :  { %v141_v3 = vsub.f32 %v138_v0, %v140_v2 }
 0x520   :  { %v142_v4 = vmul.f32 1.442695, %v141_v3 }
 0x522   :  { %294 = vpow2.f32 %v142_v4 }
 0x528   :  { %v295_v5 = vpop.eup %294 }
 0x529   :  { %144 = vadd.xlane.f32.xlu1 %v295_v5  ;;  %v146_v54 = vmul.f32 %v295_v5, %v38_v41 }
 0x59c   :  { %v145_v7 = vpop.xlane.xlu1 %144 }
 0x59d   :  { %296 = vrcp.f32 %v145_v7 }
 0x5a3   :  { %v297_v9 = vpop.eup %296 }
 0x5a4   :  { %v150_v10 = vmul.f32 %v297_v9, %v145_v7 }
 0x5a6   :  { %v151_v11 = vsub.f32 2.0, %v150_v10 }
 0x5a8   :  { %v456_v12 = vmul.f32 %v297_v9, %v151_v11 }
 0x5aa   :  { %v159_v14 = vmul.f32 %v295_v5, %v456_v12 }
 0x5ac   :  { %v160_v15 = vsub.f32 0.95, %v159_v14 }
 0x5ae   :  { %v161_v16 = vmul.f32 %v160_v15, %v136_v62  ;;  %v96_v62 = vmul.f32 %v442_v40, %v38_v41 }
 0x5b0   :  { %v162_v17 = vmul.f32 %v161_v16, %v420_v8 }
 0x5b2   :  { %v163_v19 = vadd.f32 %v162_v17, %v416_v6 }
 0x5b4   :  { %164 = vmax.xlane.f32.xlu2 %v163_v19 }
 0x627   :  { %v165_v20 = vpop.xlane.xlu2 %164 }
 0x628   :  { %v166_v21 = vsub.f32 %v163_v19, %v165_v20 }
 0x62a   :  { %v167_v22 = vmul.f32 1.442695, %v166_v21 }
 0x62c   :  { %298 = vpow2.f32 %v167_v22 }
 0x632   :  { %v299_v23 = vpop.eup %298 }
 0x633   :  { %169 = vadd.xlane.f32.xlu0 %v299_v23 }
 0x6a6   :  { %v170_v24 = vpop.xlane.xlu0 %169 }
 0x6a7   :  { %300 = vrcp.f32 %v170_v24 }
 0x6ad   :  { %v301_v25 = vpop.eup %300 }
 0x6ae   :  { %v175_v27 = vmul.f32 %v301_v25, %v170_v24 }
 0x6b0   :  { %v176_v28 = vsub.f32 2.0, %v175_v27 }
 0x6b2   :  { %v461_v29 = vmul.f32 %v301_v25, %v176_v28 }
 0x6b4   :  { %v184_v30 = vmul.f32 %v299_v23, %v461_v29 }
 0x6b6   :  { %v185_v32 = vsub.f32 0.95, %v184_v30 }
 0x6b8   :  { %v186_v33 = vmul.f32 %v185_v32, %v161_v16 }
 0x6ba   :  { %v187_v34 = vmul.f32 %v186_v33, %v420_v8 }
 0x6bc   :  { %v188_v35 = vadd.f32 %v187_v34, %v416_v6 }
 0x6be   :  { %189 = vmax.xlane.f32.xlu1 %v188_v35 }
 0x731   :  { %v190_v36 = vpop.xlane.xlu1 %189 }
 0x732   :  { %v191_v37 = vsub.f32 %v188_v35, %v190_v36 }
 0x734   :  { %v192_v38 = vmul.f32 1.442695, %v191_v37 }
 0x736   :  { %302 = vpow2.f32 %v192_v38 }
 0x73c   :  { %v303_v39 = vpop.eup %302 }
 0x73d   :  { %194 = vadd.xlane.f32.xlu2 %v303_v39  ;;  %v196_v44 = vmul.f32 %v303_v39, %v38_v41 }
 0x745   :  { %72 = vadd.xlane.f32.xlu2 %v71_v42 }
 0x74d   :  { %122 = vadd.xlane.f32.xlu2 %v121_v43 }
 0x755   :  { %197 = vadd.xlane.f32.xlu2 %v196_v44 }
 0x7b0   :  { %v195_v46 = vpop.xlane.xlu2 %194 }
 0x7b1   :  { %304 = vrcp.f32 %v195_v46 }
 0x7b7   :  { %v305_v47 = vpop.eup %304 }
 0x7b8   :  { %v200_v48 = vmul.f32 %v305_v47, %v195_v46 }
 0x7ba   :  { %v201_v49 = vsub.f32 2.0, %v200_v48 }
 0x7bc   :  { %v202_v50 = vmul.f32 %v305_v47, %v201_v49 }
 0x7be   :  { %v209_v51 = vmul.f32 %v303_v39, %v202_v50 }
 0x7c0   :  { %v210_v52 = vsub.f32 0.95, %v209_v51 }
 0x7c2   :  { %v211_v53 = vmul.f32 %v210_v52, %v186_v33 }
 0x7c4   :  { %v212_v55 = vmul.f32 %v211_v53, %v420_v8  ;;  %v171_v8 = vmul.f32 %v299_v23, %v38_v41 }
 0x7c6   :  { %v213_v1 = vadd.f32 %v212_v55, %v416_v6  ;;  %v73_v6 = vpop.xlane.xlu2 %72 }
 0x7c7   :  { %v78_v13 = vmul.f32 %v436_v31, %v73_v6 }
 0x7c8   :  { %214 = vmax.xlane.f32.xlu0 %v213_v1 }
 0x7c9   :  { %v79_v5 = vmul.f32 0.6931472, %v78_v13 }
 0x7cb   :  { %v80_v14 = vmul.f32 1.442695, %v79_v5 }
 0x7ce   :  { %v123_v0 = vpop.xlane.xlu2 %122 }
 0x7cf   :  { %v128_v4 = vmul.f32 %v451_v59, %v123_v0 }
 0x7d0   :  { %49 = vadd.xlane.f32.xlu0 %v48_v26 }
 0x7d1   :  { %v129_v10 = vmul.f32 0.6931472, %v128_v4 }
 0x7d3   :  { %v130_v20 = vmul.f32 1.442695, %v129_v10 }
 0x7d6   :  { %v198_v15 = vpop.xlane.xlu2 %197 }
 0x7d7   :  { %v203_v21 = vmul.f32 %v202_v50, %v198_v15 }
 0x7d8   :  { %147 = vadd.xlane.f32.xlu0 %v146_v54 }
 0x83b   :  { %v215_v56 = vpop.xlane.xlu0 %214 }
 0x83c   :  { %v216_v57 = vsub.f32 %v213_v1, %v215_v56 }
 0x83e   :  { %v217_v58 = vmul.f32 1.442695, %v216_v57 }
 0x840   :  { %306 = vpow2.f32 %v217_v58 }
 0x843   :  { %v50_v63 = vpop.xlane.xlu0 %49 }
 0x844   :  { %v55_v3 = vmul.f32 %v427_v18, %v50_v63 }
 0x846   :  { %v307_v60 = vpop.eup %306  ;;  %v56_v9 = vmul.f32 0.6931472, %v55_v3 }
 0x847   :  { %219 = vadd.xlane.f32.xlu1 %v307_v60  ;;  %v221_v61 = vmul.f32 %v307_v60, %v38_v41 }
 0x848   :  { %v57_v19 = vmul.f32 1.442695, %v56_v9 }
 0x849   :  { %222 = vadd.xlane.f32.xlu0 %v221_v61 }
 0x84b   :  { %v148_v7 = vpop.xlane.xlu0 %147 }
 0x84c   :  { %v153_v40 = vmul.f32 %v456_v12, %v148_v7  ;;  %v204_v12 = vmul.f32 0.6931472, %v203_v21 }
 0x84e   :  { %v154_v18 = vmul.f32 0.6931472, %v153_v40  ;;  %v205_v35 = vmul.f32 1.442695, %v204_v12 }
 0x84f   :  { %97 = vadd.xlane.f32.xlu1 %v96_v62 }
 0x850   :  { %v155_v27 = vmul.f32 1.442695, %v154_v18 }
 0x857   :  { %172 = vadd.xlane.f32.xlu1 %v171_v8 }
 0x8ba   :  { %v220_v2 = vpop.xlane.xlu1 %219 }
 0x8bb   :  { %308 = vrcp.f32 %v220_v2 }
 0x8bc   :  { %310 = vpow2.f32 %v80_v14  ;;  %v223_v24 = vpop.xlane.xlu0 %222 }
 0x8bd   :  { %312 = vpow2.f32 %v57_v19 }
 0x8be   :  { %314 = vpow2.f32 %v130_v20 }
 0x8c1   :  { %v309_v11 = vpop.eup %308 }
 0x8c2   :  { %v225_v16 = vmul.f32 %v309_v11, %v220_v2  ;;  %v98_v17 = vpop.xlane.xlu1 %97  ;;  %v311_v32 = vpop.eup %310 }
 0x8c3   :  { %v103_v31 = vmul.f32 %v445_v45, %v98_v17  ;;  %v235_v45 = vld [vmem:[%s488_s2] sm:$0xff]  ;;  %v313_v36 = vpop.eup %312  ;;  %v82_v39 = vmul.f32 0.63092977, %v311_v32  ;;  %s382_s2 = smov [#allocation5]  }
 0x8c4   :  { %v226_v22 = vsub.f32 2.0, %v225_v16  ;;  %v315_v38 = vpop.eup %314  ;;  %s261_s19 = sshll.u32 %s382_s2, 4  ;;  %s262_s19 = int_to_ptr.vmem [resolvable:$true] %s261_s19 }
 0x8c5   :  { %v104_v59 = vmul.f32 0.6931472, %v103_v31  ;;  %v83_v44 = vadd.f32 %v313_v36, %v82_v39  ;;  %v132_v48 = vmul.f32 0.43067655, %v315_v38 }
 0x8c6   :  { %v227_v23 = vmul.f32 %v309_v11, %v226_v22 }
 0x8c7   :  { %v105_v25 = vmul.f32 1.442695, %v104_v59 }
 0x8c8   :  { %v228_v28 = vmul.f32 %v227_v23, %v223_v24 }
 0x8c9   :  { %316 = vpow2.f32 %v105_v25 }
 0x8ca   :  { %v173_v30 = vpop.xlane.xlu1 %172  ;;  %v229_v33 = vmul.f32 0.6931472, %v228_v28  ;;  %318 = vpow2.f32 %v155_v27 }
 0x8cb   :  { %v178_v34 = vmul.f32 %v461_v29, %v173_v30  ;;  %320 = vrcp.f32 %v235_v45 }
 0x8cc   :  { %v230_v42 = vmul.f32 1.442695, %v229_v33  ;;  %322 = vpow2.f32 %v205_v35 }
 0x8cd   :  { %v179_v37 = vmul.f32 0.6931472, %v178_v34 }
 0x8cf   :  { %v317_v41 = vpop.eup %316  ;;  %v180_v43 = vmul.f32 1.442695, %v179_v37 }
 0x8d0   :  { %v107_v46 = vmul.f32 0.5, %v317_v41  ;;  %v319_v47 = vpop.eup %318 }
 0x8d1   :  { %324 = vpow2.f32 %v180_v43  ;;  %v321_v50 = vpop.eup %320  ;;  %v157_v52 = vmul.f32 0.3868528, %v319_v47 }
 0x8d2   :  { %v108_v49 = vadd.f32 %v107_v46, %v83_v44  ;;  %326 = vpow2.f32 %v230_v42  ;;  %v323_v51 = vpop.eup %322  ;;  %v237_v53 = vmul.f32 %v321_v50, %v235_v45 }
 0x8d3   :  { %v207_v56 = vmul.f32 0.33333334, %v323_v51 }
 0x8d4   :  { %v133_v29 = vadd.f32 %v132_v48, %v108_v49  ;;  %v238_v58 = vsub.f32 2.0, %v237_v53 }
 0x8d6   :  { %v158_v1 = vadd.f32 %v157_v52, %v133_v29  ;;  %v239_v8 = vmul.f32 %v321_v50, %v238_v58 }
 0x8d7   :  { %v325_v55 = vpop.eup %324 }
 0x8d8   :  { %v182_v26 = vmul.f32 0.3562072, %v325_v55  ;;  %v327_v54 = vpop.eup %326 }
 0x8d9   :  { %v232_v60 = vmul.f32 0.31546488, %v327_v54 }
 0x8da   :  { %v183_v57 = vadd.f32 %v182_v26, %v158_v1 }
 0x8dc   :  { %v208_v61 = vadd.f32 %v207_v56, %v183_v57 }
 0x8de   :  { %v233_v62 = vadd.f32 %v232_v60, %v208_v61 }
 0x8e0   :  { %v234_v6 = vadd.f32 1e-10, %v233_v62 }
 0x8e2   :  { %v240_v63 = vmul.f32 %v239_v8, %v234_v6 }
 0x8e4   :  { %v241_v0 = vsub.f32 1.0, %v240_v63 }
 0x8e6   :  { %v243_v13 = vsel %vm242_vm1, %v241_v0, 0.0 }
 0x8e7   :  { %244 = vadd.xlane.f32.xlu1 %v243_v13 }
 0x95a   :  { %v245_v2 = vpop.xlane.xlu1 %244 }
 0x95b   :  { %v246_v3 = vrot.slane %v245_v2, 4 }
 0x95d   :  { %v247_v4 = vadd.f32 %v246_v3, %v245_v2 }
 0x95f   :  { %v248_v5 = vrot.slane %v247_v4, 2 }
 0x961   :  { %v249_v7 = vadd.f32 %v248_v5, %v247_v4 }
 0x963   :  { %v250_v9 = vrot.slane %v249_v7, 1 }
 0x965   :  { %v251_v10 = vadd.f32 %v250_v9, %v249_v7 }
 0x967   :  { %273 = vpush %v251_v10 }
 0x998   :  { %s274_s23 = spop %273 }
 0x999   :  { %v253_v40 = vstv %s274_s23 }
 0x99a   :  { %255 = vst.msk [vmem:[#allocation5] sm:$0x1] %vm254_vm2, %v253_v40 }
 0x99b   :  { %266 = dma.vmem_to_hbm [thread:$0]  %s262_s19, 16, %s264_s22, [#allocation4]  }
 0x99c   :  { %378 = dma.done.wait [#allocation4], 16  }
 0x99d   :  { %379 = vsyncadd [#allocation4], 4294967280 }
 0x99e   :  { %271 = vsyncpa [#allocation3], 1 }
 0x99f   :  { %272 = vsyncpa [#allocation4], 1 }

</bundles_post_ra>
